<compile_context>
chip_gen: v7x
topology: tpu7x:2x2x1
jax: 0.10.0
libtpu: 0.0.40
codegen_flags: <defaults>
</compile_context>

<pallas_src>
import functools

import jax
import jax.numpy as jnp
from jax import lax
from jax.experimental import pallas as pl
from jax.experimental.pallas import tpu as pltpu

_LANE = 128


def _l2_kernel(pred_ref, target_ref, out_ref, acc_ref, *, rows, tile_rows):
    """Per-sample sum of squared differences, reduced over the row-tile axis.

    pred_ref/target_ref: (1, tile_rows, 128) VMEM tiles of one sample
    out_ref:             (1, 1, 1)   per-sample L2 norm (written on last step)
    acc_ref:             (tile_rows, 128) f32 lane-dense accumulator
    """
    r = pl.program_id(1)

    @pl.when(r == 0)
    def _():
        acc_ref[...] = jnp.zeros_like(acc_ref)

    diff = pred_ref[0].astype(jnp.float32) - target_ref[0].astype(jnp.float32)
    sq = diff * diff
    if rows % tile_rows != 0:
        # Ragged tail tile: mask rows past the true extent so out-of-bounds
        # block contents never contribute to the reduction.
        row_idx = r * tile_rows + lax.broadcasted_iota(jnp.int32, sq.shape, 0)
        sq = jnp.where(row_idx < rows, sq, 0.0)
    acc_ref[...] += sq  # pure VPU; no cross-lane work in the steady-state loop

    @pl.when(r == pl.num_programs(1) - 1)
    def _():
        total = jnp.sum(acc_ref[...])  # single cross-lane reduce per sample
        out_ref[...] = jnp.sqrt(total).reshape(1, 1, 1).astype(out_ref.dtype)


def _per_sample_l2(pred2d, target2d, block_rows=None):
    """(B, F) -> (B, 1) per-sample L2 norms of pred - target."""
    B, F = pred2d.shape

    # Lane-dense layout: F -> (R, 128). Pad only when F is not a multiple of
    # 128 (zero padding is neutral for the sum of squares).
    F_pad = -(-F // _LANE) * _LANE
    if F_pad != F:
        pad = ((0, 0), (0, F_pad - F))
        pred2d = jnp.pad(pred2d, pad)
        target2d = jnp.pad(target2d, pad)
    R = F_pad // _LANE
    pred3d = pred2d.reshape(B, R, _LANE)
    target3d = target2d.reshape(B, R, _LANE)

    if block_rows is None:
        # ~2 MiB per input block: 2 inputs x 2 pipeline buffers (+ accumulator)
        # stays inside the scoped-VMEM budget on v5e/v6e/v7x while sitting well
        # past the measured HBM-roofline tile-size sweet spot.
        itemsize = jnp.dtype(pred3d.dtype).itemsize
        block_rows = max(8, (2 * 1024 * 1024) // (_LANE * itemsize))
    block_rows = max(8, (block_rows // 8) * 8)
    # Either the full row extent (single reduction step, small problems) or a
    # multiple of 8 rows (full sublane occupancy).
    tile_r = R if R <= block_rows else block_rows
    num_r = pl.cdiv(R, tile_r)

    kernel = functools.partial(_l2_kernel, rows=R, tile_rows=tile_r)
    out = pl.pallas_call(
        kernel,
        out_shape=jax.ShapeDtypeStruct((B, 1, 1), jnp.float32),
        grid_spec=pltpu.PrefetchScalarGridSpec(
            num_scalar_prefetch=0,
            grid=(B, num_r),
            in_specs=[
                pl.BlockSpec((1, tile_r, _LANE), lambda b, r: (b, r, 0)),
                pl.BlockSpec((1, tile_r, _LANE), lambda b, r: (b, r, 0)),
            ],
            out_specs=pl.BlockSpec((1, 1, 1), lambda b, r: (b, 0, 0)),
            scratch_shapes=[pltpu.VMEM((tile_r, _LANE), jnp.float32)],
        ),
        compiler_params=pltpu.CompilerParams(
            dimension_semantics=("parallel", "arbitrary"),  # batch || reduce
            vmem_limit_bytes=32 * 1024 * 1024,
        ),
    )(pred3d, target3d)
    return out.reshape(B, 1)


class L2Loss:
    """JAX/Pallas port of the PyTorch L2Loss module."""

    def __init__(self, reduction="mean", loss_weight=1.0):
        self.reduction = reduction
        self.loss_weight = loss_weight

    def __call__(self, pred, target, block_rows=None):
        assert pred.shape == target.shape and pred.size > 0
        assert pred.shape[0] == target.shape[0]
        B = pred.shape[0]
        pred2d = pred.reshape(B, -1)
        target2d = target.reshape(B, -1)
        per_sample = _per_sample_l2(pred2d, target2d, block_rows)  # (B, 1)
        if self.reduction == "mean":
            loss = jnp.mean(per_sample)
        elif self.reduction == "sum":
            loss = jnp.sum(per_sample)
        else:  # 'none' -> (B, 1), matching torch.norm(..., keepdim=True)
            loss = per_sample
        return self.loss_weight * loss


if __name__ == "__main__":
    def ref_loss(pred, target, reduction="mean"):
        B = pred.shape[0]
        per = jnp.linalg.norm((pred - target).reshape(B, -1), axis=1, keepdims=True)
        if reduction == "mean":
            return jnp.mean(per)
        if reduction == "sum":
            return jnp.sum(per)
        return per

    key = jax.random.PRNGKey(0)
    k1, k2 = jax.random.split(key)

    # Primary check: NCHW shape implied by the module.
    B, C, H, W = 2, 4, 16, 16
    pred = jax.random.normal(k1, (B, C, H, W), dtype=jnp.float32)
    target = jax.random.normal(k2, (B, C, H, W), dtype=jnp.float32)
    loss = jax.block_until_ready(L2Loss(reduction="mean", loss_weight=1.0)(pred, target))
    ref = ref_loss(pred, target, "mean")
    assert jnp.allclose(loss, ref, rtol=1e-5, atol=1e-5), (loss, ref)

    # Secondary check: F not a multiple of 128 (pad-to-lane fallback) + 'sum'.
    k3, k4 = jax.random.split(k1)
    pred_b = jax.random.normal(k3, (2, 3, 5, 7), dtype=jnp.float32)
    target_b = jax.random.normal(k4, (2, 3, 5, 7), dtype=jnp.float32)
    loss_b = jax.block_until_ready(L2Loss(reduction="sum")(pred_b, target_b))
    ref_b = ref_loss(pred_b, target_b, "sum")
    assert jnp.allclose(loss_b, ref_b, rtol=1e-5, atol=1e-5), (loss_b, ref_b)

    # Tertiary check: multi-step reduction with a masked ragged tail tile
    # (force small block_rows so R % tile_r != 0) + 'none'.
    k5, k6 = jax.random.split(k2)
    pred_c = jax.random.normal(k5, (2, 4, 24, 24), dtype=jnp.float32)   # F=2304, R=18
    target_c = jax.random.normal(k6, (2, 4, 24, 24), dtype=jnp.float32)
    loss_c = jax.block_until_ready(
        L2Loss(reduction="none")(pred_c, target_c, block_rows=8)
    )
    ref_c = ref_loss(pred_c, target_c, "none")
    assert jnp.allclose(loss_c, ref_c, rtol=1e-5, atol=1e-5), (loss_c, ref_c)

    print("KERNEL_OK")
</pallas_src>

<mosaic_0001>
module attributes {stable_mosaic.version = 11 : i64} {
  func.func @_l2_kernel(%arg0: i32, %arg1: i32, %arg2: memref<1x8x128xf32, #tpu.memory_space<vmem>>, %arg3: memref<1x8x128xf32, #tpu.memory_space<vmem>>, %arg4: memref<1x1x1xf32, #tpu.memory_space<vmem>>, %arg5: memref<8x128xf32, #tpu.memory_space<vmem>>) attributes {dimension_semantics = [#tpu.dimension_semantics<parallel>, #tpu.dimension_semantics<arbitrary>], iteration_bounds = array<i64: 2, 1>, scalar_prefetch = 0 : i64, scratch_operands = 1 : i64, tpu.core_type = #tpu.core_type<tc>, window_params = [{transform_indices = @transform_0, window_bounds = array<i64: 1, 8, 128>}, {transform_indices = @transform_1, window_bounds = array<i64: 1, 8, 128>}, {transform_indices = @transform_2, window_bounds = array<i64: 1, 1, 1>}]} {
    %c0_i32 = arith.constant 0 : i32
    %0 = arith.cmpi eq, %arg1, %c0_i32 : i32
    %1 = arith.extui %0 : i1 to i32
    %c0_i32_0 = arith.constant 0 : i32
    %2 = arith.cmpi ne, %1, %c0_i32_0 : i32
    scf.if %2 {
      %cst = arith.constant 0.000000e+00 : f32
      %15 = vector.broadcast %cst : f32 to vector<8x128xf32>
      %c0_12 = arith.constant 0 : index
      %c0_13 = arith.constant 0 : index
      %16 = vector.load %arg5[%c0_12, %c0_13] : memref<8x128xf32, #tpu.memory_space<vmem>>, vector<8x128xf32>
      tpu.vector_store %arg5[%c0_12, %c0_13], %15 {strides = array<i32>} : memref<8x128xf32, #tpu.memory_space<vmem>>, vector<8x128xf32>,
    } else {
    }
    %c0 = arith.constant 0 : index
    %c0_1 = arith.constant 0 : index
    %c0_2 = arith.constant 0 : index
    %3 = vector.load %arg2[%c0, %c0_1, %c0_2] : memref<1x8x128xf32, #tpu.memory_space<vmem>>, vector<1x8x128xf32>
    %4 = vector.shape_cast %3 : vector<1x8x128xf32> to vector<8x128xf32>
    %c0_3 = arith.constant 0 : index
    %c0_4 = arith.constant 0 : index
    %c0_5 = arith.constant 0 : index
    %5 = vector.load %arg3[%c0_3, %c0_4, %c0_5] : memref<1x8x128xf32, #tpu.memory_space<vmem>>, vector<1x8x128xf32>
    %6 = vector.shape_cast %5 : vector<1x8x128xf32> to vector<8x128xf32>
    %7 = arith.subf %4, %6 : vector<8x128xf32>
    %8 = arith.mulf %7, %7 : vector<8x128xf32>
    %c0_6 = arith.constant 0 : index
    %c0_7 = arith.constant 0 : index
    %9 = vector.load %arg5[%c0_6, %c0_7] : memref<8x128xf32, #tpu.memory_space<vmem>>, vector<8x128xf32>
    %10 = arith.addf %9, %8 : vector<8x128xf32>
    %c0_8 = arith.constant 0 : index
    %c0_9 = arith.constant 0 : index
    %11 = vector.load %arg5[%c0_8, %c0_9] : memref<8x128xf32, #tpu.memory_space<vmem>>, vector<8x128xf32>
    tpu.vector_store %arg5[%c0_8, %c0_9], %10 {strides = array<i32>} : memref<8x128xf32, #tpu.memory_space<vmem>>, vector<8x128xf32>,
    %c0_i32_10 = arith.constant 0 : i32
    %12 = arith.cmpi eq, %arg1, %c0_i32_10 : i32
    %13 = arith.extui %12 : i1 to i32
    %c0_i32_11 = arith.constant 0 : i32
    %14 = arith.cmpi ne, %13, %c0_i32_11 : i32
    scf.if %14 {
      %c0_12 = arith.constant 0 : index
      %c0_13 = arith.constant 0 : index
      %15 = vector.load %arg5[%c0_12, %c0_13] : memref<8x128xf32, #tpu.memory_space<vmem>>, vector<8x128xf32>
      %16 = vector.shape_cast %15 : vector<8x128xf32> to vector<1x8x128xf32>
      %cst = arith.constant dense<0.000000e+00> : vector<1xf32>
      %17 = vector.multi_reduction <add>, %16, %cst [1, 2] : vector<1x8x128xf32> to vector<1xf32>
      %18 = vector.shape_cast %17 : vector<1xf32> to vector<1x1x1xf32>
      %19 = vector.extract %18[0, 0, 0] : f32 from vector<1x1x1xf32>
      %20 = math.sqrt %19 : f32
      %21 = vector.broadcast %20 : f32 to vector<1x1x1xf32>
      %c0_14 = arith.constant 0 : index
      %c0_15 = arith.constant 0 : index
      %c0_16 = arith.constant 0 : index
      %22 = vector.load %arg4[%c0_14, %c0_15, %c0_16] : memref<1x1x1xf32, #tpu.memory_space<vmem>>, vector<1x1x1xf32>
      tpu.vector_store %arg4[%c0_14, %c0_15, %c0_16], %21 {strides = array<i32>} : memref<1x1x1xf32, #tpu.memory_space<vmem>>, vector<1x1x1xf32>,
    } else {
    }
    return
  }
  func.func @transform_0(%arg0: i32, %arg1: i32) -> (i32, i32, i32) {
    %c0_i32 = arith.constant 0 : i32
    %c0_i32_0 = arith.constant 0 : i32
    return %arg0, %arg1, %c0_i32 : i32, i32, i32
  }
  func.func @transform_1(%arg0: i32, %arg1: i32) -> (i32, i32, i32) {
    %c0_i32 = arith.constant 0 : i32
    %c0_i32_0 = arith.constant 0 : i32
    return %arg0, %arg1, %c0_i32 : i32, i32, i32
  }
  func.func @transform_2(%arg0: i32, %arg1: i32) -> (i32, i32, i32) {
    %c0_i32 = arith.constant 0 : i32
    %c0_i32_0 = arith.constant 0 : i32
    %c0_i32_1 = arith.constant 0 : i32
    return %arg0, %c0_i32, %c0_i32_0 : i32, i32, i32
  }
}

</mosaic_0001>

<bundles_post_ra>
// kernel: tpu_custom_call.1
= control target key start
LH: loop header
LB: loop body
LE: loop exit
PB: predicated region body
PF: predicated region fallthrough
CT: control target
= control target key end

     0   :  { %7 = vsyncpa [#allocation4], 0  ;;  %s725_s0 = inlined_call_operand.hbm [shape: f32[2,8,128], index: 0, kind: input, shape index: {}]   ;;  %s726_s1 = inlined_call_operand.hbm [shape: f32[2,8,128], index: 1, kind: input, shape index: {}]   ;;  %s727_s2 = inlined_call_operand.vmem [shape: f32[2,1,1], index: 2, kind: output, shape index: {}]  }
   0x1   :  { %9 = vsyncpa [#allocation4 + $0x1], 0 }
   0x2   :  { %10 = vsyncpa [#allocation6], 0 }
   0x3   :  { %12 = vsyncpa [#allocation6 + $0x1], 0  ;;  %s553_s9 = smov 0   ;;  %s555_s10 = smov 0  }
   0x4   :  { %s557_s11 = smov 0   ;;  %s559_s12 = smov 0  }
   0x5   :  { %s561_s13 = smov 0   ;;  %s563_s14 = smov 0  }
   0x6 LB: > { %s341_s15 = sadd.s32 4294967295, %s534_s14   ;;  %s30_s16 = sadd.s32 1, %s530_s13  ;;  %s534_s14 = sphi %s563_s14, %s18_s14   ;;  %s530_s13 = sphi %s561_s13, %s741_s13   ;;  %s526_s12 = sphi %s559_s12, %s740_s12   ;;  %s522_s11 = sphi %s557_s11, %s739_s11   ;;  %s518_s10 = sphi %s555_s10, %s738_s10   ;;  %s514_s9 = sphi %s553_s9, %s737_s9  }
   0x7   : > { %p32_p0 = scmp.ge.s32.totalorder %s30_s16, 2  ;;  %s39_s17 = sadd.s32 1, %s522_s11 }
   0x8   : > { %p46_p1 = scmp.ne.s32.totalorder %s522_s11, %s518_s10  ;;  %p47_p2 = scmp.eq.s32.totalorder %s534_s14, 0 }
   0x9   : > { %s743_s16 = smov (%p32_p0, %s30_s16), 0  ;;  %p52_p4 = scmp.ne.s32.totalorder %s518_s10, %s514_s9 }
   0xa   : > { %p589_p3 = por %p47_p2, %p46_p1  ;;  %s34_s19 = ssub.s32 %s530_s13, %s743_s16 }
   0xb   : > { %p53_p5 = scmp.eq.s32.totalorder %s341_s15, 0  ;;  %p37_p6 = scmp.eq.s32.totalorder %s34_s19, 0 }
   0xc   : > { %p369_p8 = scmp.lt.s32.totalorder %s534_s14, 2  ;;  %s605_s22 = sand.u32 1, %s522_s11  }
   0xd   : > { %p596_p7 = por %p53_p5, %p52_p4  ;;  %s346_s23 = sshll.u32 %s530_s13, 7 }
   0xe   : > { %s602_s21 = scalar_select %p37_p6, %s522_s11, %s39_s17  }
   0xf   : > { %s730_s20 = scalar_select %p596_p7, 1, 0 }
  0x10   : > { %s345_s24 = sshll.u32 %s605_s22, 3  ;;  %s614_s27 = scalar_lea.hbm %s725_s0, %s346_s23 }
  0x11   : > { %s134_s28 = scalar_lea.vmem [#allocation3], %s345_s24  ;;  %p620_p9 = pnand %p369_p8, %p589_p3 }
  0x12   : > { %s142_s29 = sshll.u32 %s134_s28, 4  ;;  %s131_s3 = scalar_lea.sflag [#allocation4], %s605_s22  ;;  %s624_s29 = int_to_ptr.vmem [resolvable:$true] %s142_s29 }
  0x13   : > { %s420_s4 = scalar_lea.hbm %s614_s27, 128  ;;  %p422_p13 = pneg %p620_p9 }
  0x14   : > { %p421_p12 = scmp.ne.s32.totalorder %s614_s27, %s420_s4  ;;  %s425_s7 = scalar_lea.hbm %s725_s0, 256 }
  0x15   : > { %p426_p2 = scmp.lt.u32.totalorder %s614_s27, %s725_s0  ;;  %p427_p3 = scmp.lt.u32.totalorder %s425_s7, %s420_s4 }
  0x16   : > { %p423_p0 = pnand %p422_p13, %p421_p12  ;;  %p429_p5 = scmp.lt.u32.totalorder %s420_s4, %s614_s27 }
  0x17   : > { %p428_p4 = por %p427_p3, %p426_p2 }
  0x18   : > { %p424_p1 = pneg %p423_p0 }
  0x19   : > { %p430_p6 = por %p429_p5, %p428_p4 }
  0x1b   : > { %p431_p8 = pnand %p430_p6, %p424_p1 }
  0x1d   : > { %434 = shalt.err (!%p431_p8)
}
  0x1e   : > { %s435_s15 = scalar_lea.vmem %s624_s29, 128  ;;  %s536_s17 = smov [#allocation3]  }
  0x1f   : > { %p436_p12 = scmp.ne.s32.totalorder %s624_s29, %s435_s15  ;;  %s440_s18 = sshll.u32 %s536_s17, 4  ;;  %s441_s18 = int_to_ptr.vmem [resolvable:$false] %s440_s18 }
  0x20   : > { %s442_s19 = scalar_lea.vmem %s441_s18, 256  ;;  %p443_p11 = scmp.lt.s32.totalorder %s624_s29, %s441_s18 }
  0x21   : > { %p438_p0 = pnand %p436_p12, %p422_p13  ;;  %p444_p2 = scmp.lt.s32.totalorder %s442_s19, %s435_s15 }
  0x23   : > { %p439_p10 = pneg %p438_p0  ;;  %p445_p3 = por %p444_p2, %p443_p11 }
  0x25   : > { %p446_p4 = pnand %p445_p3, %p439_p10 }
  0x27   : > { %449 = shalt.err (!%p446_p4)
}
  0x28   : > { %365 = dma.hbm_to_vmem [thread:$0]  (!%p620_p9), %s614_s27, 128, %s624_s29, %s131_s3  }
  0x29   : > { %p732_p1 = scmp.lt.s32.totalorder %s534_s14, 3  ;;  %p733_p5 = scmp.ge.s32.totalorder %s534_s14, 1 }
  0x2a   : > { %s667_s4 = scalar_lea.hbm %s726_s1, %s346_s23  ;;  %s153_s5 = scalar_lea.vmem [#allocation5], %s345_s24 }
  0x2b   : > { %p658_p6 = pnand %p733_p5, %p732_p1  ;;  %s161_s6 = sshll.u32 %s153_s5, 4  ;;  %s162_s6 = int_to_ptr.vmem [resolvable:$true] %s161_s6 }
  0x2c   : > { %s150_s27 = scalar_lea.sflag [#allocation6], %s605_s22  ;;  %s450_s29 = scalar_lea.hbm %s667_s4, 128 }
  0x2d   : > { %s734_s25 = scalar_select %p658_p6, 1, 0 }
  0x2e   : > { %p451_p10 = scmp.ne.s32.totalorder %s667_s4, %s450_s29  ;;  %s455_s23 = scalar_lea.hbm %s726_s1, 256 }
  0x2f   : > { %p456_p12 = scmp.lt.u32.totalorder %s667_s4, %s726_s1  ;;  %p457_p0 = scmp.lt.u32.totalorder %s455_s23, %s450_s29 }
  0x30   : > { %p453_p11 = pnand %p451_p10, %p422_p13  ;;  %p459_p3 = scmp.lt.u32.totalorder %s450_s29, %s667_s4 }
  0x31   : > { %p458_p2 = por %p457_p0, %p456_p12 }
  0x32   : > { %p454_p8 = pneg %p453_p11 }
  0x33   : > { %p460_p4 = por %p459_p3, %p458_p2 }
  0x35   : > { %p461_p1 = pnand %p460_p4, %p454_p8 }
  0x37   : > { %464 = shalt.err (!%p461_p1)
}
  0x38   : > { %s465_s22 = scalar_lea.vmem %s162_s6, 128  ;;  %s537_s24 = smov [#allocation5]  }
  0x39   : > { %p466_p5 = scmp.ne.s32.totalorder %s162_s6, %s465_s22  ;;  %s470_s15 = sshll.u32 %s537_s24, 4  ;;  %s471_s15 = int_to_ptr.vmem [resolvable:$false] %s470_s15 }
  0x3a   : > { %s472_s17 = scalar_lea.vmem %s471_s15, 256  ;;  %p473_p7 = scmp.lt.s32.totalorder %s162_s6, %s471_s15 }
  0x3b   : > { %p468_p10 = pnand %p466_p5, %p422_p13  ;;  %p474_p6 = scmp.lt.s32.totalorder %s472_s17, %s465_s22 }
  0x3d   : > { %p469_p11 = pneg %p468_p10  ;;  %p475_p0 = por %p474_p6, %p473_p7 }
  0x3f   : > { %p476_p12 = pnand %p475_p0, %p469_p11 }
  0x41   : > { %479 = shalt.err (!%p476_p12)
}
  0x42   : > { %368 = dma.hbm_to_vmem [thread:$0]  (!%p620_p9), %s667_s4, 128, %s162_s6, %s150_s27  }
  0x43   : > { %p735_p8 = scmp.ne.s32.totalorder %s734_s25, 0 }
  0x44   : > { %s172_s18 = sand.u32 (!%p735_p8), 1, %s518_s10   ;;  %p736_p13 = scmp.ne.s32.totalorder (!%p735_p8), %s730_s20, 0 }
  0x45   : > { %170 = sbr.rel (%p735_p8) target bundleno = 356 (0x164), region = 28  ;;  %s350_s19 = sshll.u32 (!%p735_p8), %s172_s18, 3 }
  0x46   : > { %s173_s26 = scalar_lea.sflag (!%p735_p8), [#allocation4], %s172_s18  ;;  %s176_s28 = scalar_lea.vmem (!%p735_p8), [#allocation3], %s350_s19 }
  0x4c   : > { %505 = dma.done.wait (%p736_p13), %s173_s26, 128  }
  0x4d   : > { %507 = vsyncadd (%p736_p13), %s173_s26, 4294967168  ;;  %s182_s5 = scalar_lea.sflag [#allocation6], %s172_s18  ;;  %s185_s29 = scalar_lea.vmem [#allocation5], %s350_s19 }
  0x4e   : > { %509 = dma.done.wait (%p736_p13), %s182_s5, 128  }
  0x4f   : > { %511 = vsyncadd (%p736_p13), %s182_s5, 4294967168  ;;  %v217_v0 = vld [vmem:[%s176_s28] sm:$0xff]  ;;  %v218_v1 = vld [vmem:[%s185_s29] sm:$0xff]  ;;  %p209_p7 = scmp.lt.s32.totalorder %s526_s12, 1  ;;  %vm247_vm2 = vcmask 0  }
  0x50   : > { %v219_v2 = vsub.f32 %v217_v0, %v218_v1 }
  0x51   : > { %s745_s12 = smov (!%p209_p7, %s526_s12), 1 }
  0x52   : > { %v220_v3 = vmul.f32 %v219_v2, %v219_v2  ;;  %s211_s4 = scalar_lea.vmem %s727_s2, %s745_s12 }
  0x54   : > { %228 = vadd.xlane.f32.xlu0 %v220_v3 }
  0xe1   : > { %v229_v4 = vpop.xlane.xlu0 %228 }
  0xe2   : > { %v230_v5 = vrot.slane %v229_v4, 4 }
  0xe4   : > { %v231_v6 = vadd.f32 %v230_v5, %v229_v4 }
  0xe6   : > { %v232_v7 = vrot.slane %v231_v6, 2 }
  0xe8   : > { %v233_v8 = vadd.f32 %v232_v7, %v231_v6 }
  0xea   : > { %v234_v9 = vrot.slane %v233_v8, 1 }
  0xec   : > { %v235_v10 = vadd.f32 %v234_v9, %v233_v8 }
  0xee   : > { %354 = vpush %v235_v10 }
 0x11f   : > { %s355_s30 = spop %354 }
 0x120   : > { %v237_v11 = vstv %s355_s30 }
 0x121   : > { %418 = vrsqrt.f32 %v237_v11  ;;  %vm240_vm0 = vcmp.eq.f32.partialorder %v237_v11, inf  ;;  %v243_v14 = vand.u32 2147483648, %v237_v11  ;;  %vm242_vm1 = vcmp.eq.f32.partialorder %v237_v11, 0.0 }
 0x12b   : > { %v419_v12 = vpop.eup %418 }
 0x12c   : > { %v239_v13 = vmul.f32 %v419_v12, %v237_v11 }
 0x12e   : > { %v241_v15 = vsel %vm240_vm0, %v237_v11, %v239_v13 }
 0x12f   : > { %v244_v16 = vsel %vm242_vm1, %v243_v14, %v241_v15 }
 0x130   : > { %356 = vpush %v244_v16 }
 0x161   : > { %s357_s6 = spop %356 }
 0x162   : > { %v246_v17 = vstv %s357_s6 }
 0x163   : > { %248 = vst.msk [vmem:[%s211_s4] sm:$0x1] %vm247_vm2, %v246_v17 }
 0x164 PF: > { %s18_s14 = sadd.s32 1, %s534_s14   ;;  %s737_s9 = smov %s518_s10 }
 0x165   : > { %p15_p9 = scmp.ge.s32.totalorder %s18_s14, 4   ;;  %s738_s10 = smov %s522_s11 }
 0x166   : > { %s739_s11 = smov %s602_s21  ;;  %s740_s12 = smov %s530_s13 }
 0x167   : > { %s741_s13 = smov %s743_s16  ;;  %17 = sbr.rel (!%p15_p9) target bundleno = 6 (0x6), region = 89 }
 0x16e   :  { %266 = vsyncpa [#allocation4], 1 }
 0x16f   :  { %268 = vsyncpa [#allocation4 + $0x1], 1 }
 0x170   :  { %269 = vsyncpa [#allocation6], 1 }
 0x171   :  { %271 = vsyncpa [#allocation6 + $0x1], 1 }

</bundles_post_ra>
